<compile_context>
chip_gen: v5e
topology: v5e:2x2
jax: 0.10.0
libtpu: 0.0.40
codegen_flags: <defaults>
</compile_context>

<pallas_src>
import jax
import jax.numpy as jnp
from jax.experimental import pallas as pl
from jax.experimental.pallas import tpu as pltpu

_LANES = 128
_SUBLANES = 8


def _round_up(a, b):
    return -(-a // b) * b


def _make_partial_sum_kernel(rows_total, block_rows, acc_rows, bps,
                             needs_mask, compute_den):
    """Kernel producing per-slice (8, 128) partial sums of (x-t)^2 and t^2."""
    n_chunks = block_rows // acc_rows

    def kernel(x_ref, t_ref, num_out, den_out, num_acc, den_acc):
        b = pl.program_id(1)

        @pl.when(b == 0)
        def _():
            num_acc[...] = jnp.zeros_like(num_acc)
            if compute_den:
                den_acc[...] = jnp.zeros_like(den_acc)

        # Global row index of the first row of this (logical) block.  Padding
        # grid steps (blocks that don't split evenly across slices) and the
        # partial last block are handled by the row mask below.
        logical_block = pl.program_id(0) * bps + b
        row0 = logical_block * block_rows

        def chunk_body(ci, carry):
            off = pl.multiple_of(ci * acc_rows, acc_rows)
            x = x_ref[pl.ds(off, acc_rows), :].astype(jnp.float32)
            t = t_ref[pl.ds(off, acc_rows), :].astype(jnp.float32)
            if needs_mask:
                # Mask the LOADED values (OOB rows may be garbage / NaN) so the
                # masked rows contribute exactly zero to both sums.
                rid = row0 + off + jax.lax.broadcasted_iota(
                    jnp.int32, (acc_rows, 1), 0)
                valid = rid < rows_total
                x = jnp.where(valid, x, 0.0)
                t = jnp.where(valid, t, 0.0)
            d = x - t
            num_acc[...] += d * d           # per-vreg VPU adds, no reduce chain
            if compute_den:
                den_acc[...] += t * t
            return carry

        jax.lax.fori_loop(0, n_chunks, chunk_body, 0,
                          unroll=(n_chunks <= 32))

        @pl.when(b == pl.num_programs(1) - 1)
        def _():
            # One-time fold of the wide accumulator down to an (8, 128) block.
            num_out[...] = jnp.sum(
                num_acc[...].reshape(acc_rows // _SUBLANES, _SUBLANES, _LANES),
                axis=0)
            if compute_den:
                den_out[...] = jnp.sum(
                    den_acc[...].reshape(acc_rows // _SUBLANES, _SUBLANES,
                                         _LANES),
                    axis=0)
            else:
                den_out[...] = jnp.zeros_like(den_out)

    return kernel


def _posreg_partial_sums(x2d, t2d, *, block_rows, acc_rows, num_slices,
                         compute_den, vmem_limit_bytes):
    """Pallas sum((x-t)^2) and sum(t^2) over a lane-dense (rows, 128) view."""
    rows = x2d.shape[0]

    acc_rows = max(_SUBLANES, min(_round_up(int(acc_rows), _SUBLANES),
                                  _round_up(rows, _SUBLANES)))
    block_rows = max(acc_rows, min(_round_up(int(block_rows), acc_rows),
                                   _round_up(rows, acc_rows)))
    total_blocks = pl.cdiv(rows, block_rows)
    num_slices = max(1, min(int(num_slices), total_blocks))
    bps = pl.cdiv(total_blocks, num_slices)          # blocks per slice
    needs_mask = (rows % block_rows != 0) or (num_slices * bps != total_blocks)

    kernel = _make_partial_sum_kernel(rows, block_rows, acc_rows, bps,
                                      needs_mask, compute_den)

    def in_map(c, b):
        # Clamp so padding grid steps re-read the last valid block; their rows
        # are masked to zero in the kernel.
        return (jnp.minimum(c * bps + b, total_blocks - 1), 0)

    def out_map(c, b):
        return (c, 0, 0)

    itemsize = jnp.dtype(x2d.dtype).itemsize
    cost = pl.CostEstimate(
        flops=5 * rows * _LANES,
        transcendentals=0,
        bytes_accessed=2 * rows * _LANES * itemsize
        + 2 * num_slices * _SUBLANES * _LANES * 4)

    compiler_kwargs = dict(dimension_semantics=("parallel", "arbitrary"))
    if vmem_limit_bytes is not None:
        compiler_kwargs["vmem_limit_bytes"] = int(vmem_limit_bytes)

    num_out, den_out = pl.pallas_call(
        kernel,
        out_shape=(
            jax.ShapeDtypeStruct((num_slices, _SUBLANES, _LANES), jnp.float32),
            jax.ShapeDtypeStruct((num_slices, _SUBLANES, _LANES), jnp.float32),
        ),
        grid_spec=pltpu.PrefetchScalarGridSpec(
            num_scalar_prefetch=0,
            grid=(num_slices, bps),
            in_specs=[
                pl.BlockSpec((block_rows, _LANES), in_map),
                pl.BlockSpec((block_rows, _LANES), in_map),
            ],
            out_specs=[
                pl.BlockSpec((None, _SUBLANES, _LANES), out_map),
                pl.BlockSpec((None, _SUBLANES, _LANES), out_map),
            ],
            scratch_shapes=[
                pltpu.VMEM((acc_rows, _LANES), jnp.float32),  # sum((x-t)^2)
                pltpu.VMEM((acc_rows, _LANES), jnp.float32),  # sum(t^2)
            ],
        ),
        compiler_params=pltpu.CompilerParams(**compiler_kwargs),
        cost_estimate=cost,
    )(x2d, t2d)

    num_sq = jnp.sum(num_out)
    den_sq = jnp.sum(den_out) if compute_den else jnp.float32(0.0)
    return num_sq, den_sq


def posreg_loss(inp, target, *, norm_distance=True, reduction="mean",
                block_rows=8192, acc_rows=512, num_slices=2,
                min_pallas_elements=65536, vmem_limit_bytes=None):
    """Pallas implementation of POSREGLoss.forward(input, target)."""
    if reduction not in ("mean", "sum"):
        raise ValueError("reduction must be 'mean' or 'sum'")
    if inp.shape != target.shape:
        raise ValueError("input and target must have the same shape")
    # torch.mean / torch.sum of a 0-d tensor are the identity, so `reduction`
    # does not change the value; it is only validated for parity.

    x = jnp.ravel(inp)      # free reshape; keep native dtype (cast in-kernel)
    t = jnp.ravel(target)
    n = x.shape[0]

    if n < min_pallas_elements:
        # Tiny inputs (the typical (B, 3) position batch): pallas_call fixed
        # overhead dominates, plain jnp is faster and exact.
        xf = x.astype(jnp.float32)
        tf = t.astype(jnp.float32)
        loss = jnp.sqrt(jnp.sum(jnp.square(xf - tf)))
        if norm_distance:
            # NOTE: matches PyTorch — no epsilon; all-zero target gives inf/nan.
            loss = loss / jnp.sqrt(jnp.sum(jnp.square(tf)))
        return loss

    rows = n // _LANES
    rem = n - rows * _LANES

    num_sq = jnp.float32(0.0)
    den_sq = jnp.float32(0.0)
    if rows > 0:
        # Lane-dense (rows, 128) view of the 128-divisible prefix.  When n is a
        # multiple of 128 this is a free reshape (no pad, no copy); otherwise
        # XLA materializes the prefix slice once (still simpler than padding
        # both arrays up to a full block multiple).
        x_main = x[: rows * _LANES].reshape(rows, _LANES)
        t_main = t[: rows * _LANES].reshape(rows, _LANES)
        num_sq, den_sq = _posreg_partial_sums(
            x_main, t_main, block_rows=block_rows, acc_rows=acc_rows,
            num_slices=num_slices, compute_den=norm_distance,
            vmem_limit_bytes=vmem_limit_bytes)

    if rem:
        # <128-element tail folded in with plain jnp (negligible work).
        xt = x[rows * _LANES:].astype(jnp.float32)
        tt = t[rows * _LANES:].astype(jnp.float32)
        num_sq = num_sq + jnp.sum(jnp.square(xt - tt))
        if norm_distance:
            den_sq = den_sq + jnp.sum(jnp.square(tt))

    loss = jnp.sqrt(num_sq)
    if norm_distance:
        loss = loss / jnp.sqrt(den_sq)
    return loss


def _posreg_loss_ref(inp, target, norm_distance=True):
    d = inp.astype(jnp.float32) - target.astype(jnp.float32)
    loss = jnp.sqrt(jnp.sum(jnp.square(d)))
    if norm_distance:
        loss = loss / jnp.sqrt(jnp.sum(jnp.square(target.astype(jnp.float32))))
    return loss


if __name__ == "__main__":
    key = jax.random.PRNGKey(0)
    ks = jax.random.split(key, 8)

    # Case A: module-typical tiny batch of 3-D positions -> jnp fast path.
    tgt_a = jax.random.normal(ks[0], (64, 3), jnp.float32) * 5.0
    inp_a = tgt_a + 0.1 * jax.random.normal(ks[1], (64, 3), jnp.float32)
    la = jax.block_until_ready(posreg_loss(inp_a, tgt_a))
    ra = _posreg_loss_ref(inp_a, tgt_a)
    assert jnp.allclose(la, ra, rtol=1e-5, atol=1e-6), (la, ra)

    # Case B: Pallas path, n divisible by 128 (free reshape, no masking).
    tgt_b = jax.random.normal(ks[2], (2048, 8), jnp.float32) * 3.0
    inp_b = tgt_b + 0.05 * jax.random.normal(ks[3], (2048, 8), jnp.float32)
    lb = jax.block_until_ready(posreg_loss(inp_b, tgt_b, min_pallas_elements=0))
    rb = _posreg_loss_ref(inp_b, tgt_b)
    assert jnp.allclose(lb, rb, rtol=1e-5, atol=1e-6), (lb, rb)

    # Case C: Pallas path with a multi-block grid, 2 parallel slices, in-kernel
    # row masking and a <128-element wrapper tail; reduction='sum'.
    tgt_c = jax.random.normal(ks[4], (2000, 3), jnp.float32) * 3.0
    inp_c = tgt_c + 0.05 * jax.random.normal(ks[5], (2000, 3), jnp.float32)
    lc = jax.block_until_ready(
        posreg_loss(inp_c, tgt_c, reduction="sum", block_rows=16, acc_rows=8,
                    min_pallas_elements=0))
    rc = _posreg_loss_ref(inp_c, tgt_c)
    assert jnp.allclose(lc, rc, rtol=1e-5, atol=1e-6), (lc, rc)

    # Case D: norm_distance=False on the same data, default tiling.
    ld = jax.block_until_ready(
        posreg_loss(inp_c, tgt_c, norm_distance=False, min_pallas_elements=0))
    rd = _posreg_loss_ref(inp_c, tgt_c, norm_distance=False)
    assert jnp.allclose(ld, rd, rtol=1e-5, atol=1e-6), (ld, rd)

    # Case E: bf16 inputs -> cast to f32 inside the kernel (no wrapper astype).
    tgt_e = (jax.random.normal(ks[6], (1024, 4), jnp.float32) * 2.0
             ).astype(jnp.bfloat16)
    inp_e = (tgt_e.astype(jnp.float32)
             + 0.05 * jax.random.normal(ks[7], (1024, 4), jnp.float32)
             ).astype(jnp.bfloat16)
    le = jax.block_until_ready(posreg_loss(inp_e, tgt_e, min_pallas_elements=0))
    re = _posreg_loss_ref(inp_e, tgt_e)
    assert jnp.allclose(le, re, rtol=1e-4, atol=1e-5), (le, re)

    print("KERNEL_OK")
</pallas_src>

<mosaic_0001>
module attributes {stable_mosaic.version = 11 : i64} {
  func.func @kernel(%arg0: i32, %arg1: i32, %arg2: memref<128x128xf32, #tpu.memory_space<vmem>>, %arg3: memref<128x128xf32, #tpu.memory_space<vmem>>, %arg4: memref<1x8x128xf32, #tpu.memory_space<vmem>>, %arg5: memref<1x8x128xf32, #tpu.memory_space<vmem>>, %arg6: memref<128x128xf32, #tpu.memory_space<vmem>>, %arg7: memref<128x128xf32, #tpu.memory_space<vmem>>) attributes {dimension_semantics = [#tpu.dimension_semantics<parallel>, #tpu.dimension_semantics<arbitrary>], iteration_bounds = array<i64: 1, 1>, scalar_prefetch = 0 : i64, scratch_operands = 2 : i64, tpu.core_type = #tpu.core_type<tc>, window_params = [{transform_indices = @transform_0, window_bounds = array<i64: 128, 128>}, {transform_indices = @transform_1, window_bounds = array<i64: 128, 128>}, {transform_indices = @transform_2, window_bounds = array<i64: 1, 8, 128>}, {transform_indices = @transform_3, window_bounds = array<i64: 1, 8, 128>}]} {
    %c0_i32 = arith.constant 0 : i32
    %0 = arith.cmpi eq, %arg1, %c0_i32 : i32
    %1 = arith.extui %0 : i1 to i32
    %c0_i32_0 = arith.constant 0 : i32
    %2 = arith.cmpi ne, %1, %c0_i32_0 : i32
    scf.if %2 {
      %cst = arith.constant 0.000000e+00 : f32
      %21 = vector.broadcast %cst : f32 to vector<128x128xf32>
      %c0_13 = arith.constant 0 : index
      %c0_14 = arith.constant 0 : index
      %22 = vector.load %arg6[%c0_13, %c0_14] : memref<128x128xf32, #tpu.memory_space<vmem>>, vector<128x128xf32>
      tpu.vector_store %arg6[%c0_13, %c0_14], %21 {strides = array<i32>} : memref<128x128xf32, #tpu.memory_space<vmem>>, vector<128x128xf32>,
      %cst_15 = arith.constant 0.000000e+00 : f32
      %23 = vector.broadcast %cst_15 : f32 to vector<128x128xf32>
      %c0_16 = arith.constant 0 : index
      %c0_17 = arith.constant 0 : index
      %24 = vector.load %arg7[%c0_16, %c0_17] : memref<128x128xf32, #tpu.memory_space<vmem>>, vector<128x128xf32>
      tpu.vector_store %arg7[%c0_16, %c0_17], %23 {strides = array<i32>} : memref<128x128xf32, #tpu.memory_space<vmem>>, vector<128x128xf32>,
    } else {
    }
    %c0_i32_1 = arith.constant 0 : i32
    %c128_i32 = arith.constant 128 : i32
    %3 = arith.muli %c0_i32_1, %c128_i32 : i32
    %4 = tpu.assume_multiple %3, 128 : i32
    %5 = arith.index_cast %4 : i32 to index
    %c0 = arith.constant 0 : index
    %6 = vector.load %arg2[%5, %c0] : memref<128x128xf32, #tpu.memory_space<vmem>>, vector<128x128xf32>
    %7 = arith.index_cast %4 : i32 to index
    %c0_2 = arith.constant 0 : index
    %8 = vector.load %arg3[%7, %c0_2] : memref<128x128xf32, #tpu.memory_space<vmem>>, vector<128x128xf32>
    %9 = arith.subf %6, %8 : vector<128x128xf32>
    %c0_3 = arith.constant 0 : index
    %c0_4 = arith.constant 0 : index
    %10 = vector.load %arg6[%c0_3, %c0_4] : memref<128x128xf32, #tpu.memory_space<vmem>>, vector<128x128xf32>
    %11 = arith.mulf %9, %9 : vector<128x128xf32>
    %12 = arith.addf %10, %11 : vector<128x128xf32>
    %c0_5 = arith.constant 0 : index
    %c0_6 = arith.constant 0 : index
    %13 = vector.load %arg6[%c0_5, %c0_6] : memref<128x128xf32, #tpu.memory_space<vmem>>, vector<128x128xf32>
    tpu.vector_store %arg6[%c0_5, %c0_6], %12 {strides = array<i32>} : memref<128x128xf32, #tpu.memory_space<vmem>>, vector<128x128xf32>,
    %c0_7 = arith.constant 0 : index
    %c0_8 = arith.constant 0 : index
    %14 = vector.load %arg7[%c0_7, %c0_8] : memref<128x128xf32, #tpu.memory_space<vmem>>, vector<128x128xf32>
    %15 = arith.mulf %8, %8 : vector<128x128xf32>
    %16 = arith.addf %14, %15 : vector<128x128xf32>
    %c0_9 = arith.constant 0 : index
    %c0_10 = arith.constant 0 : index
    %17 = vector.load %arg7[%c0_9, %c0_10] : memref<128x128xf32, #tpu.memory_space<vmem>>, vector<128x128xf32>
    tpu.vector_store %arg7[%c0_9, %c0_10], %16 {strides = array<i32>} : memref<128x128xf32, #tpu.memory_space<vmem>>, vector<128x128xf32>,
    %c1_i32 = arith.constant 1 : i32
    %c0_i32_11 = arith.constant 0 : i32
    %18 = arith.cmpi eq, %arg1, %c0_i32_11 : i32
    %19 = arith.extui %18 : i1 to i32
    %c0_i32_12 = arith.constant 0 : i32
    %20 = arith.cmpi ne, %19, %c0_i32_12 : i32
    scf.if %20 {
      %c0_13 = arith.constant 0 : index
      %c0_14 = arith.constant 0 : index
      %21 = vector.load %arg6[%c0_13, %c0_14] : memref<128x128xf32, #tpu.memory_space<vmem>>, vector<128x128xf32>
      %22 = vector.shape_cast %21 : vector<128x128xf32> to vector<16x8x128xf32>
      %cst = arith.constant dense<0.000000e+00> : vector<8x128xf32>
      %23 = vector.multi_reduction <add>, %22, %cst [0] : vector<16x8x128xf32> to vector<8x128xf32>
      %c0_15 = arith.constant 0 : index
      %c0_16 = arith.constant 0 : index
      %c0_17 = arith.constant 0 : index
      %24 = vector.load %arg4[%c0_15, %c0_16, %c0_17] : memref<1x8x128xf32, #tpu.memory_space<vmem>>, vector<1x8x128xf32>
      %25 = vector.shape_cast %24 : vector<1x8x128xf32> to vector<8x128xf32>
      %26 = vector.shape_cast %23 : vector<8x128xf32> to vector<1x8x128xf32>
      tpu.vector_store %arg4[%c0_15, %c0_16, %c0_17], %26 {strides = array<i32>} : memref<1x8x128xf32, #tpu.memory_space<vmem>>, vector<1x8x128xf32>,
      %c0_18 = arith.constant 0 : index
      %c0_19 = arith.constant 0 : index
      %27 = vector.load %arg7[%c0_18, %c0_19] : memref<128x128xf32, #tpu.memory_space<vmem>>, vector<128x128xf32>
      %28 = vector.shape_cast %27 : vector<128x128xf32> to vector<16x8x128xf32>
      %cst_20 = arith.constant dense<0.000000e+00> : vector<8x128xf32>
      %29 = vector.multi_reduction <add>, %28, %cst_20 [0] : vector<16x8x128xf32> to vector<8x128xf32>
      %c0_21 = arith.constant 0 : index
      %c0_22 = arith.constant 0 : index
      %c0_23 = arith.constant 0 : index
      %30 = vector.load %arg5[%c0_21, %c0_22, %c0_23] : memref<1x8x128xf32, #tpu.memory_space<vmem>>, vector<1x8x128xf32>
      %31 = vector.shape_cast %30 : vector<1x8x128xf32> to vector<8x128xf32>
      %32 = vector.shape_cast %29 : vector<8x128xf32> to vector<1x8x128xf32>
      tpu.vector_store %arg5[%c0_21, %c0_22, %c0_23], %32 {strides = array<i32>} : memref<1x8x128xf32, #tpu.memory_space<vmem>>, vector<1x8x128xf32>,
    } else {
    }
    return
  }
  func.func @transform_0(%arg0: i32, %arg1: i32) -> (i32, i32) {
    %c1_i32 = arith.constant 1 : i32
    %0 = arith.muli %arg0, %c1_i32 : i32
    %1 = arith.addi %0, %arg1 : i32
    %c0_i32 = arith.constant 0 : i32
    %2 = arith.minsi %1, %c0_i32 : i32
    %c0_i32_0 = arith.constant 0 : i32
    %c0_i32_1 = arith.constant 0 : i32
    return %2, %c0_i32_0 : i32, i32
  }
  func.func @transform_1(%arg0: i32, %arg1: i32) -> (i32, i32) {
    %c1_i32 = arith.constant 1 : i32
    %0 = arith.muli %arg0, %c1_i32 : i32
    %1 = arith.addi %0, %arg1 : i32
    %c0_i32 = arith.constant 0 : i32
    %2 = arith.minsi %1, %c0_i32 : i32
    %c0_i32_0 = arith.constant 0 : i32
    %c0_i32_1 = arith.constant 0 : i32
    return %2, %c0_i32_0 : i32, i32
  }
  func.func @transform_2(%arg0: i32, %arg1: i32) -> (i32, i32, i32) {
    %c0_i32 = arith.constant 0 : i32
    %c0_i32_0 = arith.constant 0 : i32
    %c0_i32_1 = arith.constant 0 : i32
    return %arg0, %c0_i32, %c0_i32_0 : i32, i32, i32
  }
  func.func @transform_3(%arg0: i32, %arg1: i32) -> (i32, i32, i32) {
    %c0_i32 = arith.constant 0 : i32
    %c0_i32_0 = arith.constant 0 : i32
    %c0_i32_1 = arith.constant 0 : i32
    return %arg0, %c0_i32, %c0_i32_0 : i32, i32, i32
  }
}

</mosaic_0001>

<bundles_post_ra>
// kernel: tpu_custom_call.1
= control target key start
LH: loop header
LB: loop body
LE: loop exit
PB: predicated region body
PF: predicated region fallthrough
CT: control target
= control target key end

     0   :  { %9 = vsyncpa [#allocation5], 0  ;;  %s532_s0 = inlined_call_operand.hbm [shape: f32[128,128], index: 0, kind: input, shape index: {}]   ;;  %s533_s1 = inlined_call_operand.hbm [shape: f32[128,128], index: 1, kind: input, shape index: {}]   ;;  %s534_s2 = inlined_call_operand.hbm [shape: f32[1,8,128], index: 2, kind: output, shape index: {0}]   ;;  %s535_s3 = inlined_call_operand.hbm [shape: f32[1,8,128], index: 3, kind: output, shape index: {1}]  }
   0x1   :  { %10 = vsyncpa [#allocation8], 0 }
   0x2   :  { %11 = vsyncpa [#allocation6], 0 }
   0x3   :  { %12 = vsyncpa [#allocation11], 0  ;;  %s23_s14 = sshll.u32 %s532_s0, 4  ;;  %s494_s15 = smov [#allocation4]   ;;  %s24_s14 = int_to_ptr.hbm [resolvable:$true] %s23_s14 }
   0x4   :  { %s25_s16 = sshll.u32 %s494_s15, 4  ;;  %s42_s19 = sshll.u32 %s533_s1, 4  ;;  %s26_s16 = int_to_ptr.vmem [resolvable:$true] %s25_s16  ;;  %s43_s19 = int_to_ptr.hbm [resolvable:$true] %s42_s19 }
   0x5   :  { %s495_s20 = smov 128   ;;  %s496_s21 = smov 8  }
   0x6   :  { %31 = dma.hbm_to_vmem [thread:$0]  %s24_s14, 2048, %s26_s16, [#allocation5], %s495_s20, %s495_s20, %s496_s21  }
   0x7   :  { %s497_s22 = smov [#allocation7]  }
   0x8   :  { %s44_s23 = sshll.u32 %s497_s22, 4  ;;  %s45_s23 = int_to_ptr.vmem [resolvable:$true] %s44_s23 }
   0x9   :  { %50 = dma.hbm_to_vmem [thread:$0]  %s43_s19, 2048, %s45_s23, [#allocation8], %s495_s20, %s495_s20, %s496_s21  }
   0xa   :  { %486 = dma.done.wait [#allocation5], 2048  }
   0xb   :  { %487 = vsyncadd [#allocation5], 4294965248 }
   0xc   :  { %488 = dma.done.wait [#allocation8], 2048  }
   0xd   :  { %489 = vsyncadd [#allocation8], 4294965248  ;;  %v103_v0 = vld [vmem:[#allocation4] sm:$0xff]  ;;  %v104_v1 = vld [vmem:[#allocation4 + $0x8] sm:$0xff]  ;;  %s498_s0 = smov [#allocation9]   ;;  %s353_s26 = sshll.u32 %s534_s2, 4  ;;  %s354_s26 = int_to_ptr.hbm [resolvable:$true] %s353_s26 }
   0xe   :  { %v105_v2 = vld [vmem:[#allocation4 + $0x10] sm:$0xff]  ;;  %v119_v3 = vld [vmem:[#allocation7] sm:$0xff]  ;;  %v120_v4 = vld [vmem:[#allocation7 + $0x8] sm:$0xff]  ;;  %s351_s1 = sshll.u32 %s498_s0, 4  ;;  %s499_s27 = smov [#allocation10]   ;;  %s352_s1 = int_to_ptr.vmem [resolvable:$true] %s351_s1 }
   0xf   :  { %v121_v5 = vld [vmem:[#allocation7 + $0x10] sm:$0xff]  ;;  %v135_v6 = vsub.f32 %v103_v0, %v119_v3  ;;  %v136_v7 = vsub.f32 %v104_v1, %v120_v4  ;;  %v106_v8 = vld [vmem:[#allocation4 + $0x18] sm:$0xff]  ;;  %v107_v11 = vld [vmem:[#allocation4 + $0x20] sm:$0xff]  ;;  %v231_v22 = vmul.f32 %v119_v3, %v119_v3  ;;  %v232_v28 = vmul.f32 %v120_v4, %v120_v4  ;;  %s362_s28 = sshll.u32 %s499_s27, 4  ;;  %s364_s4 = sshll.u32 %s535_s3, 4  ;;  %s363_s28 = int_to_ptr.vmem [resolvable:$true] %s362_s28  ;;  %s365_s4 = int_to_ptr.hbm [resolvable:$true] %s364_s4 }
  0x10   :  { %v122_v9 = vld [vmem:[#allocation7 + $0x18] sm:$0xff]  ;;  %v137_v10 = vsub.f32 %v105_v2, %v121_v5  ;;  %v123_v12 = vld [vmem:[#allocation7 + $0x20] sm:$0xff]  ;;  %v108_v16 = vld [vmem:[#allocation4 + $0x28] sm:$0xff]  ;;  %v233_v34 = vmul.f32 %v121_v5, %v121_v5 }
  0x11   :  { %v138_v13 = vsub.f32 %v106_v8, %v122_v9  ;;  %v167_v14 = vmul.f32 %v135_v6, %v135_v6  ;;  %v168_v15 = vmul.f32 %v136_v7, %v136_v7  ;;  %v124_v17 = vld [vmem:[#allocation7 + $0x28] sm:$0xff]  ;;  %v139_v18 = vsub.f32 %v107_v11, %v123_v12  ;;  %v109_v20 = vld [vmem:[#allocation4 + $0x30] sm:$0xff]  ;;  %v110_v23 = vld [vmem:[#allocation4 + $0x38] sm:$0xff] }
  0x12   :  { %v169_v19 = vmul.f32 %v137_v10, %v137_v10  ;;  %v125_v21 = vld [vmem:[#allocation7 + $0x30] sm:$0xff]  ;;  %v126_v24 = vld [vmem:[#allocation7 + $0x38] sm:$0xff]  ;;  %v140_v25 = vsub.f32 %v108_v16, %v124_v17  ;;  %v111_v29 = vld [vmem:[#allocation4 + $0x40] sm:$0xff]  ;;  %v234_v40 = vmul.f32 %v122_v9, %v122_v9  ;;  %v330_v41 = vadd.f32 %v232_v28, %v231_v22 }
  0x13   :  { %v170_v26 = vmul.f32 %v138_v13, %v138_v13  ;;  %v298_v27 = vadd.f32 %v168_v15, %v167_v14  ;;  %v127_v30 = vld [vmem:[#allocation7 + $0x40] sm:$0xff]  ;;  %v141_v31 = vsub.f32 %v109_v20, %v125_v21  ;;  %v171_v32 = vmul.f32 %v139_v18, %v139_v18  ;;  %v112_v36 = vld [vmem:[#allocation4 + $0x48] sm:$0xff]  ;;  %v113_v43 = vld [vmem:[#allocation4 + $0x50] sm:$0xff] }
  0x14   :  { %v142_v35 = vsub.f32 %v110_v23, %v126_v24  ;;  %v128_v37 = vld [vmem:[#allocation7 + $0x48] sm:$0xff]  ;;  %v172_v38 = vmul.f32 %v140_v25, %v140_v25  ;;  %v143_v42 = vsub.f32 %v111_v29, %v127_v30  ;;  %v129_v44 = vld [vmem:[#allocation7 + $0x50] sm:$0xff]  ;;  %v235_v47 = vmul.f32 %v123_v12, %v123_v12  ;;  %v114_v50 = vld [vmem:[#allocation4 + $0x58] sm:$0xff] }
  0x15   :  { %v299_v33 = vadd.f32 %v298_v27, %v169_v19  ;;  %v173_v45 = vmul.f32 %v141_v31, %v141_v31  ;;  %v331_v48 = vadd.f32 %v330_v41, %v233_v34  ;;  %v144_v49 = vsub.f32 %v112_v36, %v128_v37  ;;  %v130_v51 = vld [vmem:[#allocation7 + $0x58] sm:$0xff]  ;;  %v115_v57 = vld [vmem:[#allocation4 + $0x60] sm:$0xff]  ;;  %v116_v0 = vld [vmem:[#allocation4 + $0x68] sm:$0xff] }
  0x16   :  { %v174_v52 = vmul.f32 %v142_v35, %v142_v35  ;;  %v236_v54 = vmul.f32 %v124_v17, %v124_v17  ;;  %v145_v56 = vsub.f32 %v113_v43, %v129_v44  ;;  %v131_v58 = vld [vmem:[#allocation7 + $0x60] sm:$0xff]  ;;  %v175_v59 = vmul.f32 %v143_v42, %v143_v42  ;;  %v132_v1 = vld [vmem:[#allocation7 + $0x68] sm:$0xff]  ;;  %v117_v7 = vld [vmem:[#allocation4 + $0x70] sm:$0xff] }
  0x17   :  { %v300_v39 = vadd.f32 %v299_v33, %v170_v26  ;;  %v332_v55 = vadd.f32 %v331_v48, %v234_v40  ;;  %v237_v61 = vmul.f32 %v125_v21, %v125_v21  ;;  %v146_v63 = vsub.f32 %v114_v50, %v130_v51  ;;  %v133_v8 = vld [vmem:[#allocation7 + $0x70] sm:$0xff]  ;;  %v118_v14 = vld [vmem:[#allocation4 + $0x78] sm:$0xff] }
  0x18   :  { %v176_v2 = vmul.f32 %v144_v49, %v144_v49  ;;  %v238_v4 = vmul.f32 %v126_v24, %v126_v24  ;;  %v147_v6 = vsub.f32 %v115_v57, %v131_v58  ;;  %v177_v9 = vmul.f32 %v145_v56, %v145_v56  ;;  %v134_v15 = vld [vmem:[#allocation7 + $0x78] sm:$0xff] }
  0x19   :  { %v301_v46 = vadd.f32 %v300_v39, %v171_v32  ;;  %v333_v62 = vadd.f32 %v332_v55, %v235_v47  ;;  %v239_v11 = vmul.f32 %v127_v30, %v127_v30  ;;  %v148_v13 = vsub.f32 %v116_v0, %v132_v1 }
  0x1a   :  { %v178_v16 = vmul.f32 %v146_v63, %v146_v63  ;;  %v240_v18 = vmul.f32 %v128_v37, %v128_v37  ;;  %v149_v20 = vsub.f32 %v117_v7, %v133_v8  ;;  %v179_v21 = vmul.f32 %v147_v6, %v147_v6 }
  0x1b   :  { %v302_v53 = vadd.f32 %v301_v46, %v172_v38  ;;  %v334_v5 = vadd.f32 %v333_v62, %v236_v54  ;;  %v241_v23 = vmul.f32 %v129_v44, %v129_v44  ;;  %v150_v25 = vsub.f32 %v118_v14, %v134_v15 }
  0x1c   :  { %v180_v26 = vmul.f32 %v148_v13, %v148_v13  ;;  %v242_v28 = vmul.f32 %v130_v51, %v130_v51  ;;  %v181_v31 = vmul.f32 %v149_v20, %v149_v20  ;;  %v243_v32 = vmul.f32 %v131_v58, %v131_v58 }
  0x1d   :  { %v303_v60 = vadd.f32 %v302_v53, %v173_v45  ;;  %v335_v12 = vadd.f32 %v334_v5, %v237_v61  ;;  %v182_v34 = vmul.f32 %v150_v25, %v150_v25  ;;  %v244_v36 = vmul.f32 %v132_v1, %v132_v1 }
  0x1e   :  { %v245_v39 = vmul.f32 %v133_v8, %v133_v8  ;;  %v246_v42 = vmul.f32 %v134_v15, %v134_v15 }
  0x1f   :  { %v304_v3 = vadd.f32 %v303_v60, %v174_v52  ;;  %v336_v19 = vadd.f32 %v335_v12, %v238_v4 }
  0x21   :  { %v305_v10 = vadd.f32 %v304_v3, %v175_v59  ;;  %v337_v24 = vadd.f32 %v336_v19, %v239_v11 }
  0x23   :  { %v306_v17 = vadd.f32 %v305_v10, %v176_v2  ;;  %v338_v29 = vadd.f32 %v337_v24, %v240_v18 }
  0x25   :  { %v307_v22 = vadd.f32 %v306_v17, %v177_v9  ;;  %v339_v33 = vadd.f32 %v338_v29, %v241_v23 }
  0x27   :  { %v308_v27 = vadd.f32 %v307_v22, %v178_v16  ;;  %v340_v38 = vadd.f32 %v339_v33, %v242_v28 }
  0x29   :  { %v309_v30 = vadd.f32 %v308_v27, %v179_v21  ;;  %v341_v40 = vadd.f32 %v340_v38, %v243_v32 }
  0x2b   :  { %v310_v35 = vadd.f32 %v309_v30, %v180_v26  ;;  %v342_v43 = vadd.f32 %v341_v40, %v244_v36 }
  0x2d   :  { %v311_v37 = vadd.f32 %v310_v35, %v181_v31  ;;  %v343_v44 = vadd.f32 %v342_v43, %v245_v39 }
  0x2f   :  { %v312_v41 = vadd.f32 %v311_v37, %v182_v34  ;;  %v344_v45 = vadd.f32 %v343_v44, %v246_v42 }
  0x31   :  { %313 = vst [vmem:[#allocation9] sm:$0xff] %v312_v41 }
  0x32   :  { %356 = dma.vmem_to_hbm [thread:$0]  %s352_s1, 128, %s354_s26, [#allocation6]   ;;  %345 = vst [vmem:[#allocation10] sm:$0xff] %v344_v45 }
  0x33   :  { %367 = dma.vmem_to_hbm [thread:$0]  %s363_s28, 128, %s365_s4, [#allocation11]  }
  0x34   :  { %490 = dma.done.wait [#allocation6], 128  }
  0x35   :  { %491 = vsyncadd [#allocation6], 4294967168 }
  0x36   :  { %492 = dma.done.wait [#allocation11], 128  }
  0x37   :  { %493 = vsyncadd [#allocation11], 4294967168 }
  0x38   :  { %376 = vsyncpa [#allocation5], 1 }
  0x39   :  { %377 = vsyncpa [#allocation8], 1 }
  0x3a   :  { %378 = vsyncpa [#allocation6], 1 }
  0x3b   :  { %379 = vsyncpa [#allocation11], 1 }

</bundles_post_ra>
